<compile_context>
chip_gen: v7x
topology: tpu7x:2x2x1
jax: 0.10.0
libtpu: 0.0.40
codegen_flags: <defaults>
</compile_context>

<pallas_src>
import jax
import jax.numpy as jnp
from jax.experimental import pallas as pl
from jax.experimental.pallas import tpu as pltpu

LANE = 128


def _round_up(n: int, m: int) -> int:
    return ((n + m - 1) // m) * m


def _chip_defaults():
    """Generation-aware defaults: (batch_tile, want_two_grid_tiles)."""
    try:
        kind = jax.devices()[0].device_kind.lower()
    except Exception:  # pragma: no cover - e.g. no devices during tracing tools
        kind = ""
    if "v5" in kind:
        return 128, False          # v5e: 4x128^2 MXU, single TC
    if "v7" in kind:
        return 256, True           # v7x: 2x256^2 MXU, two TCs per chip
    return 256, False              # v6e (and unknown): 2x256^2 MXU, single TC


def mlp_kernel(x_ref,
               w1_ref, b1_ref,
               w2_ref, b2_ref,
               w3_ref, b3_ref,
               w4_ref, b4_ref,
               w5_ref, b5_ref,
               o_ref):
    """One batch tile through all 5 layers; weights/biases are VMEM-resident.

    Activations stay bf16 between layers; each matmul accumulates in f32 on the MXU,
    bias-add + ReLU in f32, then narrows back to bf16 (except the final layer, whose
    f32 result feeds the output store directly).
    """

    def layer(h, w_ref, b_ref, keep_f32=False):
        y = jnp.dot(h, w_ref[...], preferred_element_type=jnp.float32)
        y = jnp.maximum(y + b_ref[...].astype(jnp.float32), 0.0)
        return y if keep_f32 else y.astype(jnp.bfloat16)

    h = x_ref[...]                      # already bf16, fed straight to the MXU
    h = layer(h, w1_ref, b1_ref)
    h = layer(h, w2_ref, b2_ref)
    h = layer(h, w3_ref, b3_ref)
    h = layer(h, w4_ref, b4_ref)
    h = layer(h, w5_ref, b5_ref, keep_f32=True)
    o_ref[...] = h.astype(o_ref.dtype)


def pad_and_cast_params(params, weight_dtype=jnp.bfloat16):
    """Zero-pad every layer boundary to a multiple of 128 lanes; cast W to bf16.

    Biases stay f32 (tiny; added to the f32 accumulator).
    """
    padded = []
    for (w, b) in params:
        fin, fout = w.shape
        pin, pout = _round_up(fin, LANE), _round_up(fout, LANE)
        wp = jnp.zeros((pin, pout), weight_dtype).at[:fin, :fout].set(
            w.astype(weight_dtype))
        bp = jnp.zeros((1, pout), jnp.float32).at[:, :fout].set(
            b.astype(jnp.float32))
        padded.append((wp, bp))
    return padded


def dist_optimizer_forward(x, params, *, tm=None, out_dtype=jnp.float32):
    """params = [(w1, b1), ..., (w5, b5)] with w_i (in, out) f32, b_i (1, out) f32.

    Computes ReLU((...ReLU(x @ w1 + b1)...) @ w5 + b5) with bf16 weights/activations
    and f32 MXU accumulation.
    """
    B, D = x.shape
    out_dim = params[-1][0].shape[1]

    pparams = pad_and_cast_params(params)
    Dp = pparams[0][0].shape[0]
    out_p = pparams[-1][0].shape[1]

    tm_default, want_two_tiles = _chip_defaults()
    TM = tm if tm is not None else tm_default

    # Batch padding / tiling: block second-to-last dim must be a multiple of 8.
    B_pad = _round_up(B, 8)
    if B_pad < TM:
        TM = B_pad
    else:
        B_pad = _round_up(B, TM)

    # v7x: make sure the "parallel" grid axis has >= 2 steps whenever the batch allows,
    # so work is actually sharded across both TensorCores.
    if want_two_tiles:
        while B_pad // TM < 2 and TM > 8 and TM % 16 == 0:
            TM //= 2
            B_pad = _round_up(B, TM)

    grid = (B_pad // TM,)

    # Input activations in bf16: halves the per-tile activation DMA and removes a
    # useless cast chain inside the kernel.
    xp = jnp.zeros((B_pad, Dp), jnp.bfloat16).at[:B, :D].set(
        x.astype(jnp.bfloat16))

    # Grid-invariant weights/biases: whole-array VMEM residents (single buffer).
    resident = pl.BlockSpec(memory_space=pltpu.MemorySpace.VMEM)
    in_specs = [pl.BlockSpec((TM, Dp), lambda i: (i, 0))]
    flat = []
    for (w, b) in pparams:
        flat.extend([w, b])
        in_specs.extend([resident, resident])

    out_itemsize = jnp.dtype(out_dtype).itemsize
    resident_bytes = sum(w.size * w.dtype.itemsize + b.size * b.dtype.itemsize
                         for (w, b) in pparams)
    # double-buffered x tile (bf16) + double-buffered out tile
    pipeline_bytes = 2 * TM * Dp * 2 + 2 * TM * out_p * out_itemsize
    vmem_limit = int((resident_bytes + pipeline_bytes) * 1.25)
    vmem_limit = min(max(vmem_limit, 32 << 20), 64 << 20)  # sane floor; <= v7x physical

    flops = 2 * B_pad * sum(w.shape[0] * w.shape[1] for (w, _) in pparams)
    bytes_accessed = (xp.size * xp.dtype.itemsize
                      + resident_bytes
                      + B_pad * out_p * out_itemsize)

    out_full = pl.pallas_call(
        mlp_kernel,
        out_shape=jax.ShapeDtypeStruct((B_pad, out_p), out_dtype),
        grid_spec=pltpu.PrefetchScalarGridSpec(
            num_scalar_prefetch=0,
            grid=grid,
            in_specs=in_specs,
            out_specs=pl.BlockSpec((TM, out_p), lambda i: (i, 0)),
        ),
        compiler_params=pltpu.CompilerParams(
            dimension_semantics=("parallel",),
            vmem_limit_bytes=vmem_limit),
        cost_estimate=pl.CostEstimate(
            flops=int(flops), transcendentals=0,
            bytes_accessed=int(bytes_accessed)),
    )(xp, *flat)

    return out_full[:B, :out_dim]


def make_params(dims, key):
    """Deterministic init matching DistOptimizer(dims) Linear shapes.

    PyTorch Linear weight is (out, in); we store (in, out) so the kernel does x @ W.
    """
    layer_dims = [(dims, dims * 2),
                  (dims * 2, dims * 8),
                  (dims * 8, dims * 8),
                  (dims * 8, dims * 2),
                  (dims * 2, dims)]
    params = []
    for (fan_in, fan_out) in layer_dims:
        key, kw, kb = jax.random.split(key, 3)
        bound = 1.0 / jnp.sqrt(jnp.float32(fan_in))
        w = jax.random.uniform(kw, (fan_in, fan_out), jnp.float32, -bound, bound)
        b = jax.random.uniform(kb, (1, fan_out), jnp.float32, -bound, bound)
        params.append((w, b))
    return params


def reference_forward(x, params):
    """Pure-JAX reference with the SAME bf16-activation / f32-accumulate recipe."""
    h = x.astype(jnp.bfloat16)
    n = len(params)
    for i, (w, b) in enumerate(params):
        y = jnp.dot(h, w.astype(jnp.bfloat16),
                    preferred_element_type=jnp.float32)
        y = jnp.maximum(y + b.astype(jnp.float32), 0.0)
        h = y if i == n - 1 else y.astype(jnp.bfloat16)
    return h


def reference_forward_f32(x, params):
    """Full-precision reference matching the PyTorch module exactly (sanity check)."""
    h = x.astype(jnp.float32)
    for (w, b) in params:
        h = jnp.maximum(jnp.dot(h, w) + b, 0.0)
    return h


if __name__ == "__main__":
    dims = 32
    batch = 8

    key = jax.random.PRNGKey(0)
    key, kx = jax.random.split(key)
    x = jax.random.normal(kx, (batch, dims), jnp.float32)

    params = make_params(dims, key)

    out = dist_optimizer_forward(x, params)
    out = jax.block_until_ready(out)

    assert out.shape == (batch, dims)

    ref = reference_forward(x, params)
    assert jnp.allclose(out, ref, atol=2e-2, rtol=2e-2), \
        "mismatch vs same-recipe bf16 reference"

    # Looser check against the f32 (PyTorch-equivalent) reference: bounds bf16 drift.
    ref32 = reference_forward_f32(x, params)
    assert jnp.allclose(out, ref32, atol=5e-2, rtol=5e-2), \
        "mismatch vs f32 reference"

    print("KERNEL_OK")
</pallas_src>

<mosaic_0001>
module attributes {stable_mosaic.version = 11 : i64} {
  func.func @mlp_kernel(%arg0: i32, %arg1: memref<8x128xbf16, #tpu.memory_space<vmem>>, %arg2: memref<128x128xbf16, #tpu.memory_space<vmem>>, %arg3: memref<1x128xf32, #tpu.memory_space<vmem>>, %arg4: memref<128x256xbf16, #tpu.memory_space<vmem>>, %arg5: memref<1x256xf32, #tpu.memory_space<vmem>>, %arg6: memref<256x256xbf16, #tpu.memory_space<vmem>>, %arg7: memref<1x256xf32, #tpu.memory_space<vmem>>, %arg8: memref<256x128xbf16, #tpu.memory_space<vmem>>, %arg9: memref<1x128xf32, #tpu.memory_space<vmem>>, %arg10: memref<128x128xbf16, #tpu.memory_space<vmem>>, %arg11: memref<1x128xf32, #tpu.memory_space<vmem>>, %arg12: memref<8x128xf32, #tpu.memory_space<vmem>>) attributes {dimension_semantics = [#tpu.dimension_semantics<parallel>], iteration_bounds = array<i64: 1>, scalar_prefetch = 0 : i64, scratch_operands = 0 : i64, tpu.core_type = #tpu.core_type<tc>, window_params = [{transform_indices = @transform_0, window_bounds = array<i64: 8, 128>}, {pipeline_mode = #tpu.pipeline_mode<synchronous>, transform_indices = @transform_1, window_bounds = array<i64: 128, 128>}, {pipeline_mode = #tpu.pipeline_mode<synchronous>, transform_indices = @transform_2, window_bounds = array<i64: 1, 128>}, {pipeline_mode = #tpu.pipeline_mode<synchronous>, transform_indices = @transform_3, window_bounds = array<i64: 128, 256>}, {pipeline_mode = #tpu.pipeline_mode<synchronous>, transform_indices = @transform_4, window_bounds = array<i64: 1, 256>}, {pipeline_mode = #tpu.pipeline_mode<synchronous>, transform_indices = @transform_5, window_bounds = array<i64: 256, 256>}, {pipeline_mode = #tpu.pipeline_mode<synchronous>, transform_indices = @transform_6, window_bounds = array<i64: 1, 256>}, {pipeline_mode = #tpu.pipeline_mode<synchronous>, transform_indices = @transform_7, window_bounds = array<i64: 256, 128>}, {pipeline_mode = #tpu.pipeline_mode<synchronous>, transform_indices = @transform_8, window_bounds = array<i64: 1, 128>}, {pipeline_mode = #tpu.pipeline_mode<synchronous>, transform_indices = @transform_9, window_bounds = array<i64: 128, 128>}, {pipeline_mode = #tpu.pipeline_mode<synchronous>, transform_indices = @transform_10, window_bounds = array<i64: 1, 128>}, {transform_indices = @transform_11, window_bounds = array<i64: 8, 128>}]} {
    %c0 = arith.constant 0 : index
    %c0_0 = arith.constant 0 : index
    %0 = vector.load %arg1[%c0, %c0_0] : memref<8x128xbf16, #tpu.memory_space<vmem>>, vector<8x128xbf16>
    %c0_1 = arith.constant 0 : index
    %c0_2 = arith.constant 0 : index
    %1 = vector.load %arg2[%c0_1, %c0_2] : memref<128x128xbf16, #tpu.memory_space<vmem>>, vector<128x128xbf16>
    %cst = arith.constant dense<0.000000e+00> : vector<8x128xf32>
    %2 = tpu.matmul %0, %1, %cst {dimension_numbers = #tpu.dot_dimension_numbers<[1], [0], [0], [1], [0, 0, 1, 1], [], []>} : vector<8x128xbf16>, vector<128x128xbf16>, vector<8x128xf32> -> vector<8x128xf32>
    %c0_3 = arith.constant 0 : index
    %c0_4 = arith.constant 0 : index
    %3 = vector.load %arg3[%c0_3, %c0_4] : memref<1x128xf32, #tpu.memory_space<vmem>>, vector<1x128xf32>
    %4 = vector.broadcast %3 : vector<1x128xf32> to vector<8x128xf32>
    %5 = arith.addf %2, %4 : vector<8x128xf32>
    %cst_5 = arith.constant 0.000000e+00 : f32
    %6 = vector.broadcast %cst_5 : f32 to vector<8x128xf32>
    %7 = arith.maximumf %5, %6 : vector<8x128xf32>
    %8 = arith.truncf %7 : vector<8x128xf32> to vector<8x128xbf16>
    %c0_6 = arith.constant 0 : index
    %c0_7 = arith.constant 0 : index
    %9 = vector.load %arg4[%c0_6, %c0_7] : memref<128x256xbf16, #tpu.memory_space<vmem>>, vector<128x256xbf16>
    %cst_8 = arith.constant dense<0.000000e+00> : vector<8x256xf32>
    %10 = tpu.matmul %8, %9, %cst_8 {dimension_numbers = #tpu.dot_dimension_numbers<[1], [0], [0], [1], [0, 0, 1, 1], [], []>} : vector<8x128xbf16>, vector<128x256xbf16>, vector<8x256xf32> -> vector<8x256xf32>
    %c0_9 = arith.constant 0 : index
    %c0_10 = arith.constant 0 : index
    %11 = vector.load %arg5[%c0_9, %c0_10] : memref<1x256xf32, #tpu.memory_space<vmem>>, vector<1x256xf32>
    %12 = vector.broadcast %11 : vector<1x256xf32> to vector<8x256xf32>
    %13 = arith.addf %10, %12 : vector<8x256xf32>
    %cst_11 = arith.constant 0.000000e+00 : f32
    %14 = vector.broadcast %cst_11 : f32 to vector<8x256xf32>
    %15 = arith.maximumf %13, %14 : vector<8x256xf32>
    %16 = arith.truncf %15 : vector<8x256xf32> to vector<8x256xbf16>
    %c0_12 = arith.constant 0 : index
    %c0_13 = arith.constant 0 : index
    %17 = vector.load %arg6[%c0_12, %c0_13] : memref<256x256xbf16, #tpu.memory_space<vmem>>, vector<256x256xbf16>
    %cst_14 = arith.constant dense<0.000000e+00> : vector<8x256xf32>
    %18 = tpu.matmul %16, %17, %cst_14 {dimension_numbers = #tpu.dot_dimension_numbers<[1], [0], [0], [1], [0, 0, 1, 1], [], []>} : vector<8x256xbf16>, vector<256x256xbf16>, vector<8x256xf32> -> vector<8x256xf32>
    %c0_15 = arith.constant 0 : index
    %c0_16 = arith.constant 0 : index
    %19 = vector.load %arg7[%c0_15, %c0_16] : memref<1x256xf32, #tpu.memory_space<vmem>>, vector<1x256xf32>
    %20 = vector.broadcast %19 : vector<1x256xf32> to vector<8x256xf32>
    %21 = arith.addf %18, %20 : vector<8x256xf32>
    %cst_17 = arith.constant 0.000000e+00 : f32
    %22 = vector.broadcast %cst_17 : f32 to vector<8x256xf32>
    %23 = arith.maximumf %21, %22 : vector<8x256xf32>
    %24 = arith.truncf %23 : vector<8x256xf32> to vector<8x256xbf16>
    %c0_18 = arith.constant 0 : index
    %c0_19 = arith.constant 0 : index
    %25 = vector.load %arg8[%c0_18, %c0_19] : memref<256x128xbf16, #tpu.memory_space<vmem>>, vector<256x128xbf16>
    %cst_20 = arith.constant dense<0.000000e+00> : vector<8x128xf32>
    %26 = tpu.matmul %24, %25, %cst_20 {dimension_numbers = #tpu.dot_dimension_numbers<[1], [0], [0], [1], [0, 0, 1, 1], [], []>} : vector<8x256xbf16>, vector<256x128xbf16>, vector<8x128xf32> -> vector<8x128xf32>
    %c0_21 = arith.constant 0 : index
    %c0_22 = arith.constant 0 : index
    %27 = vector.load %arg9[%c0_21, %c0_22] : memref<1x128xf32, #tpu.memory_space<vmem>>, vector<1x128xf32>
    %28 = vector.broadcast %27 : vector<1x128xf32> to vector<8x128xf32>
    %29 = arith.addf %26, %28 : vector<8x128xf32>
    %cst_23 = arith.constant 0.000000e+00 : f32
    %30 = vector.broadcast %cst_23 : f32 to vector<8x128xf32>
    %31 = arith.maximumf %29, %30 : vector<8x128xf32>
    %32 = arith.truncf %31 : vector<8x128xf32> to vector<8x128xbf16>
    %c0_24 = arith.constant 0 : index
    %c0_25 = arith.constant 0 : index
    %33 = vector.load %arg10[%c0_24, %c0_25] : memref<128x128xbf16, #tpu.memory_space<vmem>>, vector<128x128xbf16>
    %cst_26 = arith.constant dense<0.000000e+00> : vector<8x128xf32>
    %34 = tpu.matmul %32, %33, %cst_26 {dimension_numbers = #tpu.dot_dimension_numbers<[1], [0], [0], [1], [0, 0, 1, 1], [], []>} : vector<8x128xbf16>, vector<128x128xbf16>, vector<8x128xf32> -> vector<8x128xf32>
    %c0_27 = arith.constant 0 : index
    %c0_28 = arith.constant 0 : index
    %35 = vector.load %arg11[%c0_27, %c0_28] : memref<1x128xf32, #tpu.memory_space<vmem>>, vector<1x128xf32>
    %36 = vector.broadcast %35 : vector<1x128xf32> to vector<8x128xf32>
    %37 = arith.addf %34, %36 : vector<8x128xf32>
    %cst_29 = arith.constant 0.000000e+00 : f32
    %38 = vector.broadcast %cst_29 : f32 to vector<8x128xf32>
    %39 = arith.maximumf %37, %38 : vector<8x128xf32>
    %c0_30 = arith.constant 0 : index
    %c0_31 = arith.constant 0 : index
    %40 = vector.load %arg12[%c0_30, %c0_31] : memref<8x128xf32, #tpu.memory_space<vmem>>, vector<8x128xf32>
    tpu.vector_store %arg12[%c0_30, %c0_31], %39 {strides = array<i32>} : memref<8x128xf32, #tpu.memory_space<vmem>>, vector<8x128xf32>,
    return
  }
  func.func @transform_0(%arg0: i32) -> (i32, i32) {
    %c0_i32 = arith.constant 0 : i32
    %c0_i32_0 = arith.constant 0 : i32
    return %arg0, %c0_i32 : i32, i32
  }
  func.func @transform_1(%arg0: i32) -> (i32, i32) {
    %c0_i32 = arith.constant 0 : i32
    %c0_i32_0 = arith.constant 0 : i32
    %c0_i32_1 = arith.constant 0 : i32
    return %c0_i32, %c0_i32_0 : i32, i32
  }
  func.func @transform_2(%arg0: i32) -> (i32, i32) {
    %c0_i32 = arith.constant 0 : i32
    %c0_i32_0 = arith.constant 0 : i32
    %c0_i32_1 = arith.constant 0 : i32
    return %c0_i32, %c0_i32_0 : i32, i32
  }
  func.func @transform_3(%arg0: i32) -> (i32, i32) {
    %c0_i32 = arith.constant 0 : i32
    %c0_i32_0 = arith.constant 0 : i32
    %c0_i32_1 = arith.constant 0 : i32
    return %c0_i32, %c0_i32_0 : i32, i32
  }
  func.func @transform_4(%arg0: i32) -> (i32, i32) {
    %c0_i32 = arith.constant 0 : i32
    %c0_i32_0 = arith.constant 0 : i32
    %c0_i32_1 = arith.constant 0 : i32
    return %c0_i32, %c0_i32_0 : i32, i32
  }
  func.func @transform_5(%arg0: i32) -> (i32, i32) {
    %c0_i32 = arith.constant 0 : i32
    %c0_i32_0 = arith.constant 0 : i32
    %c0_i32_1 = arith.constant 0 : i32
    return %c0_i32, %c0_i32_0 : i32, i32
  }
  func.func @transform_6(%arg0: i32) -> (i32, i32) {
    %c0_i32 = arith.constant 0 : i32
    %c0_i32_0 = arith.constant 0 : i32
    %c0_i32_1 = arith.constant 0 : i32
    return %c0_i32, %c0_i32_0 : i32, i32
  }
  func.func @transform_7(%arg0: i32) -> (i32, i32) {
    %c0_i32 = arith.constant 0 : i32
    %c0_i32_0 = arith.constant 0 : i32
    %c0_i32_1 = arith.constant 0 : i32
    return %c0_i32, %c0_i32_0 : i32, i32
  }
  func.func @transform_8(%arg0: i32) -> (i32, i32) {
    %c0_i32 = arith.constant 0 : i32
    %c0_i32_0 = arith.constant 0 : i32
    %c0_i32_1 = arith.constant 0 : i32
    return %c0_i32, %c0_i32_0 : i32, i32
  }
  func.func @transform_9(%arg0: i32) -> (i32, i32) {
    %c0_i32 = arith.constant 0 : i32
    %c0_i32_0 = arith.constant 0 : i32
    %c0_i32_1 = arith.constant 0 : i32
    return %c0_i32, %c0_i32_0 : i32, i32
  }
  func.func @transform_10(%arg0: i32) -> (i32, i32) {
    %c0_i32 = arith.constant 0 : i32
    %c0_i32_0 = arith.constant 0 : i32
    %c0_i32_1 = arith.constant 0 : i32
    return %c0_i32, %c0_i32_0 : i32, i32
  }
  func.func @transform_11(%arg0: i32) -> (i32, i32) {
    %c0_i32 = arith.constant 0 : i32
    %c0_i32_0 = arith.constant 0 : i32
    return %arg0, %c0_i32 : i32, i32
  }
}

</mosaic_0001>

<bundles_post_ra>
// kernel: tpu_custom_call.1
= control target key start
LH: loop header
LB: loop body
LE: loop exit
PB: predicated region body
PF: predicated region fallthrough
CT: control target
= control target key end

     0   :  { %16 = vsyncpa [#allocation3], 0  ;;  %s1597_s0 = inlined_call_operand.hbm [shape: bf16[8,128], index: 0, kind: input, shape index: {}]   ;;  %s1598_s1 = inlined_call_operand.hbm [shape: bf16[128,128], index: 1, kind: input, shape index: {}]   ;;  %s1599_s2 = inlined_call_operand.vmem [shape: f32[1,128], index: 2, kind: input, shape index: {}]   ;;  %s1600_s3 = inlined_call_operand.hbm [shape: bf16[128,256], index: 3, kind: input, shape index: {}]   ;;  %s1601_s4 = inlined_call_operand.vmem [shape: f32[1,256], index: 4, kind: input, shape index: {}]   ;;  %s1602_s5 = inlined_call_operand.hbm [shape: bf16[256,256], index: 5, kind: input, shape index: {}]   ;;  %s1603_s6 = inlined_call_operand.vmem [shape: f32[1,256], index: 6, kind: input, shape index: {}]   ;;  %s1604_s7 = inlined_call_operand.hbm [shape: bf16[256,128], index: 7, kind: input, shape index: {}]   ;;  %s1605_s8 = inlined_call_operand.vmem [shape: f32[1,128], index: 8, kind: input, shape index: {}]   ;;  %s1606_s9 = inlined_call_operand.hbm [shape: bf16[128,128], index: 9, kind: input, shape index: {}]   ;;  %s1607_s10 = inlined_call_operand.vmem [shape: f32[1,128], index: 10, kind: input, shape index: {}]   ;;  %s1608_s11 = inlined_call_operand.hbm [shape: f32[8,128], index: 11, kind: output, shape index: {}]  }
   0x1   :  { %17 = vsyncpa [#allocation6], 0 }
   0x2   :  { %18 = vsyncpa [#allocation9], 0 }
   0x3   :  { %19 = vsyncpa [#allocation12], 0 }
   0x4   :  { %20 = vsyncpa [#allocation4], 0  ;;  %s1389_s17 = smov [#allocation5]   ;;  %s1225_s21 = scalar_lea.hbm %s1598_s1, 1024 }
   0x5   :  { %s36_s18 = sshll.u32 %s1389_s17, 4  ;;  %p1226_p0 = scmp.ne.s32.totalorder %s1598_s1, %s1225_s21  ;;  %s37_s18 = int_to_ptr.vmem [resolvable:$true] %s36_s18 }
   0x6   :  { %p1229_p1 = scmp.lt.u32.totalorder %s1225_s21, %s1598_s1 }
   0x8   :  { %p1231_p2 = pnand %p1229_p1, %p1226_p0 }
   0xa   :  { %1234 = shalt.err (!%p1231_p2)
}
   0xb   :  { %s1235_s26 = scalar_lea.vmem %s37_s18, 1024  ;;  %p1240_p4 = scmp.lt.s32.totalorder %s37_s18, %s37_s18 }
   0xc   :  { %p1236_p3 = scmp.ne.s32.totalorder %s37_s18, %s1235_s26  ;;  %p1241_p5 = scmp.lt.s32.totalorder %s1235_s26, %s1235_s26 }
   0xe   :  { %p1242_p6 = por %p1241_p5, %p1240_p4 }
  0x10   :  { %p1243_p7 = pnand %p1242_p6, %p1236_p3 }
  0x12   :  { %1246 = shalt.err (!%p1243_p7)
}
  0x13   :  { %s1390_s27 = smov 64   ;;  %s1391_s28 = smov 4  }
  0x14   :  { %42 = dma.hbm_to_vmem [thread:$0]  %s1598_s1, 1024, %s37_s18, [#allocation6], %s1390_s27, %s1390_s27, %s1391_s28  }
  0x15   :  { %s1392_s12 = smov [#allocation8]   ;;  %s1393_s14 = smov [#allocation2]  }
  0x16   :  { %s64_s13 = sshll.u32 %s1392_s12, 4  ;;  %s27_s15 = sshll.u32 %s1393_s14, 4  ;;  %s65_s13 = int_to_ptr.vmem [resolvable:$true] %s64_s13  ;;  %s28_s15 = int_to_ptr.vmem [resolvable:$true] %s27_s15 }
  0x17   :  { %s1247_s19 = scalar_lea.hbm %s1602_s5, 4096 }
  0x18   :  { %p1248_p8 = scmp.ne.s32.totalorder %s1602_s5, %s1247_s19  ;;  %p1251_p9 = scmp.lt.u32.totalorder %s1247_s19, %s1602_s5 }
  0x1a   :  { %p1253_p10 = pnand %p1251_p9, %p1248_p8 }
  0x1c   :  { %1256 = shalt.err (!%p1253_p10)
}
  0x1d   :  { %s1257_s1 = scalar_lea.vmem %s65_s13, 4096  ;;  %p1262_p12 = scmp.lt.s32.totalorder %s65_s13, %s65_s13 }
  0x1e   :  { %p1258_p11 = scmp.ne.s32.totalorder %s65_s13, %s1257_s1  ;;  %p1263_p13 = scmp.lt.s32.totalorder %s1257_s1, %s1257_s1 }
  0x20   :  { %p1264_p0 = por %p1263_p13, %p1262_p12 }
  0x22   :  { %p1265_p1 = pnand %p1264_p0, %p1258_p11 }
  0x24   :  { %1268 = shalt.err (!%p1265_p1)
}
  0x25   :  { %s1394_s18 = smov 128   ;;  %s1395_s24 = smov 8  }
  0x26   :  { %70 = dma.hbm_to_vmem [thread:$0]  %s1602_s5, 4096, %s65_s13, [#allocation9], %s1394_s18, %s1394_s18, %s1395_s24  }
  0x27   :  { %s1269_s12 = scalar_lea.hbm %s1597_s0, 64 }
  0x28   :  { %p1270_p2 = scmp.ne.s32.totalorder %s1597_s0, %s1269_s12  ;;  %p1273_p3 = scmp.lt.u32.totalorder %s1269_s12, %s1597_s0 }
  0x2a   :  { %p1275_p4 = pnand %p1273_p3, %p1270_p2 }
  0x2c   :  { %1278 = shalt.err (!%p1275_p4)
}
  0x2d   :  { %s1279_s20 = scalar_lea.vmem %s28_s15, 64  ;;  %p1284_p6 = scmp.lt.s32.totalorder %s28_s15, %s28_s15 }
  0x2e   :  { %p1280_p5 = scmp.ne.s32.totalorder %s28_s15, %s1279_s20  ;;  %p1285_p7 = scmp.lt.s32.totalorder %s1279_s20, %s1279_s20 }
  0x30   :  { %p1286_p8 = por %p1285_p7, %p1284_p6 }
  0x32   :  { %p1287_p9 = pnand %p1286_p8, %p1280_p5 }
  0x34   :  { %1290 = shalt.err (!%p1287_p9)
}
  0x35   :  { %30 = dma.hbm_to_vmem [thread:$0]  %s1597_s0, 64, %s28_s15, [#allocation3]  }
  0x36   :  { %s1396_s21 = smov [#allocation7]   ;;  %s1397_s23 = smov [#allocation10]  }
  0x37   :  { %s50_s22 = sshll.u32 %s1396_s21, 4  ;;  %s78_s1 = sshll.u32 %s1397_s23, 4  ;;  %s51_s22 = int_to_ptr.vmem [resolvable:$true] %s50_s22  ;;  %s79_s1 = int_to_ptr.vmem [resolvable:$true] %s78_s1 }
  0x38   :  { %s1291_s29 = scalar_lea.hbm %s1600_s3, 2048 }
  0x39   :  { %p1292_p10 = scmp.ne.s32.totalorder %s1600_s3, %s1291_s29  ;;  %p1295_p11 = scmp.lt.u32.totalorder %s1291_s29, %s1600_s3 }
  0x3b   :  { %p1297_p12 = pnand %p1295_p11, %p1292_p10 }
  0x3d   :  { %1300 = shalt.err (!%p1297_p12)
}
  0x3e   :  { %s1301_s0 = scalar_lea.vmem %s51_s22, 2048  ;;  %p1306_p0 = scmp.lt.s32.totalorder %s51_s22, %s51_s22 }
  0x3f   :  { %p1302_p13 = scmp.ne.s32.totalorder %s51_s22, %s1301_s0  ;;  %p1307_p1 = scmp.lt.s32.totalorder %s1301_s0, %s1301_s0 }
  0x41   :  { %p1308_p2 = por %p1307_p1, %p1306_p0 }
  0x43   :  { %p1309_p3 = pnand %p1308_p2, %p1302_p13 }
  0x45   :  { %1312 = shalt.err (!%p1309_p3)
}
  0x46   :  { %56 = dma.hbm_to_vmem [thread:$0]  %s1600_s3, 2048, %s51_s22, [#allocation6], %s1394_s18, %s1394_s18, %s1395_s24  }
  0x47   :  { %s1313_s5 = scalar_lea.hbm %s1604_s7, 2048 }
  0x48   :  { %p1314_p4 = scmp.ne.s32.totalorder %s1604_s7, %s1313_s5  ;;  %p1317_p5 = scmp.lt.u32.totalorder %s1313_s5, %s1604_s7 }
  0x4a   :  { %p1319_p6 = pnand %p1317_p5, %p1314_p4 }
  0x4c   :  { %1322 = shalt.err (!%p1319_p6)
}
  0x4d   :  { %s1323_s26 = scalar_lea.vmem %s79_s1, 2048  ;;  %p1328_p8 = scmp.lt.s32.totalorder %s79_s1, %s79_s1 }
  0x4e   :  { %p1324_p7 = scmp.ne.s32.totalorder %s79_s1, %s1323_s26  ;;  %p1329_p9 = scmp.lt.s32.totalorder %s1323_s26, %s1323_s26 }
  0x50   :  { %p1330_p10 = por %p1329_p9, %p1328_p8 }
  0x52   :  { %p1331_p11 = pnand %p1330_p10, %p1324_p7 }
  0x54   :  { %1334 = shalt.err (!%p1331_p11)
}
  0x55   :  { %84 = dma.hbm_to_vmem [thread:$0]  %s1604_s7, 2048, %s79_s1, [#allocation9], %s1390_s27, %s1390_s27, %s1391_s28  }
  0x56   :  { %s1398_s24 = smov [#allocation11]   ;;  %s1335_s12 = scalar_lea.hbm %s1606_s9, 1024 }
  0x57   :  { %s92_s22 = sshll.u32 %s1398_s24, 4  ;;  %p1336_p12 = scmp.ne.s32.totalorder %s1606_s9, %s1335_s12  ;;  %s93_s22 = int_to_ptr.vmem [resolvable:$true] %s92_s22 }
  0x58   :  { %p1339_p13 = scmp.lt.u32.totalorder %s1335_s12, %s1606_s9 }
  0x5a   :  { %p1341_p0 = pnand %p1339_p13, %p1336_p12 }
  0x5c   :  { %1344 = shalt.err (!%p1341_p0)
}
  0x5d   :  { %s1345_s17 = scalar_lea.vmem %s93_s22, 1024  ;;  %p1350_p2 = scmp.lt.s32.totalorder %s93_s22, %s93_s22 }
  0x5e   :  { %p1346_p1 = scmp.ne.s32.totalorder %s93_s22, %s1345_s17  ;;  %p1351_p3 = scmp.lt.s32.totalorder %s1345_s17, %s1345_s17 }
  0x60   :  { %p1352_p4 = por %p1351_p3, %p1350_p2 }
  0x62   :  { %p1353_p5 = pnand %p1352_p4, %p1346_p1 }
  0x64   :  { %1356 = shalt.err (!%p1353_p5)
}
  0x65   :  { %98 = dma.hbm_to_vmem [thread:$0]  %s1606_s9, 1024, %s93_s22, [#allocation12], %s1390_s27, %s1390_s27, %s1391_s28  }
  0x66   :  { %1379 = dma.done.wait [#allocation3], 64  }
  0x67   :  { %1380 = vsyncadd [#allocation3], 4294967232 }
  0x68   :  { %1381 = dma.done.wait [#allocation6], 3072  }
  0x69   :  { %1382 = vsyncadd [#allocation6], 4294964224 }
  0x6a   :  { %1383 = dma.done.wait [#allocation9], 6144  }
  0x6b   :  { %1384 = vsyncadd [#allocation9], 4294961152 }
  0x6c   :  { %1385 = dma.done.wait [#allocation12], 1024  }
  0x6d   :  { %1386 = vsyncadd [#allocation12], 4294966272  ;;  %v1399_v0 = vmov 0.0   ;;  %vm1400_vm0 = vmmov 0   ;;  %v1121_v1 = vld [vmem:[#allocation5] sm:$0xff]   ;;  %v1122_v2 = vld [vmem:[#allocation5 + $0x8] sm:$0xff]  }
  0x6e   :  { %1067 = vmatprep.subr.bf16.mxu0 %v1399_v0  ;;  %1083 = vmatprep.mubr.msk.bf16.mxu0 %vm1400_vm0, %v1399_v0  ;;  %v1123_v3 = vld [vmem:[#allocation5 + $0x10] sm:$0xff]   ;;  %v1129_v4 = vld [vmem:[#allocation7 + $0x4] ss:$8 sps:$4 sm:$0xff]   ;;  %v1131_v5 = vld [vmem:[#allocation7] ss:$8 sps:$4 sm:$0xff]   ;;  %v1401_v26 = vmov 0  }
  0x6f   :  { %1068 = vmatpush3.bf16.msra.mxu0 %v1121_v1  ;;  %v1124_v6 = vld [vmem:[#allocation5 + $0x18] sm:$0xff]   ;;  %342 = vmatprep.subr.bf16.mxu1 %v1129_v4  ;;  %v1135_v9 = vld [vmem:[#allocation7 + $0x24] ss:$8 sps:$4 sm:$0xff]   ;;  %v1137_v11 = vld [vmem:[#allocation7 + $0x20] ss:$8 sps:$4 sm:$0xff]   ;;  %s1402_s21 = smov [#allocation13]  }
  0x70   :  { %1069 = vmatprep.subr.bf16.mxu0 %v1399_v0  ;;  %v1132_v7 = vld [vmem:[#allocation7 + $0x14] ss:$8 sps:$4 sm:$0xff]   ;;  %343 = vmatpush1.bf16.msra.mxu1 %v1131_v5  ;;  %v1134_v8 = vld [vmem:[#allocation7 + $0x10] ss:$8 sps:$4 sm:$0xff]   ;;  %v1125_v10 = vld [vmem:[#allocation5 + $0x20] sm:$0xff]   ;;  %s932_s23 = sshll.u32 %s1402_s21, 4  ;;  %s933_s23 = int_to_ptr.vmem [resolvable:$true] %s932_s23 }
  0x71   :  { %344 = vmatprep.subr.bf16.mxu1 %v1132_v7  ;;  %v1126_v12 = vld [vmem:[#allocation5 + $0x28] sm:$0xff]   ;;  %v1138_v13 = vld [vmem:[#allocation7 + $0x34] ss:$8 sps:$4 sm:$0xff]   ;;  %v1140_v14 = vld [vmem:[#allocation7 + $0x30] ss:$8 sps:$4 sm:$0xff]   ;;  %374 = vmatprep.mubr.bf16.mxu1 %v1401_v26  ;;  %p1362_p7 = scmp.lt.s32.totalorder %s933_s23, %s933_s23 }
  0x72   :  { %v1141_v15 = vld [vmem:[#allocation7 + $0x44] ss:$8 sps:$4 sm:$0xff]   ;;  %v1127_v16 = vld [vmem:[#allocation5 + $0x30] sm:$0xff]   ;;  %v1143_v17 = vld [vmem:[#allocation7 + $0x40] ss:$8 sps:$4 sm:$0xff]  }
  0x73   :  { %1070 = vmatpush3.bf16.msra.mxu0 %v1122_v2  ;;  %v1144_v18 = vld [vmem:[#allocation7 + $0x54] ss:$8 sps:$4 sm:$0xff]   ;;  %v1146_v20 = vld [vmem:[#allocation7 + $0x50] ss:$8 sps:$4 sm:$0xff]   ;;  %v1147_v21 = vld [vmem:[#allocation7 + $0x64] ss:$8 sps:$4 sm:$0xff]  }
  0x74   :  { %1071 = vmatprep.subr.bf16.mxu0 %v1399_v0  ;;  %345 = vmatpush1.bf16.msra.mxu1 %v1134_v8  ;;  %v1128_v19 = vld [vmem:[#allocation5 + $0x38] sm:$0xff]   ;;  %v1149_v23 = vld [vmem:[#allocation7 + $0x60] ss:$8 sps:$4 sm:$0xff]   ;;  %v1155_v28 = vld [vmem:[#allocation8 + $0x4] ss:$8 sps:$4 sm:$0xff]  }
  0x75   :  { %346 = vmatprep.subr.bf16.mxu1 %v1135_v9  ;;  %v120_v22 = vld [vmem:[#allocation2] sm:$0xf]  ;;  %v1152_v25 = vld [vmem:[#allocation7 + $0x70] ss:$8 sps:$4 sm:$0xff]   ;;  %v1153_v27 = vld [vmem:[#allocation8] ss:$8 sps:$4 sm:$0xff]  }
  0x76   :  { %v1150_v24 = vld [vmem:[#allocation7 + $0x74] ss:$8 sps:$4 sm:$0xff]   ;;  %v1156_v30 = vld [vmem:[#allocation8 + $0x10] ss:$8 sps:$4 sm:$0xff]   ;;  %v1161_v31 = vld [vmem:[#allocation8 + $0x24] ss:$8 sps:$4 sm:$0xff]  }
  0x77   :  { %1072 = vmatpush3.bf16.msra.mxu0 %v1123_v3  ;;  %v1158_v29 = vld [vmem:[#allocation8 + $0x14] ss:$8 sps:$4 sm:$0xff]   ;;  %v1159_v32 = vld [vmem:[#allocation8 + $0x20] ss:$8 sps:$4 sm:$0xff]   ;;  %v1162_v34 = vld [vmem:[#allocation8 + $0x30] ss:$8 sps:$4 sm:$0xff]  }
  0x78   :  { %1073 = vmatprep.subr.bf16.mxu0 %v1399_v0  ;;  %347 = vmatpush1.bf16.msra.mxu1 %v1137_v11  ;;  %v1164_v33 = vld [vmem:[#allocation8 + $0x34] ss:$8 sps:$4 sm:$0xff]   ;;  %v1167_v35 = vld [vmem:[#allocation8 + $0x44] ss:$8 sps:$4 sm:$0xff]   ;;  %v1165_v36 = vld [vmem:[#allocation8 + $0x40] ss:$8 sps:$4 sm:$0xff]  }
  0x79   :  { %348 = vmatprep.subr.bf16.mxu1 %v1138_v13  ;;  %v1170_v37 = vld [vmem:[#allocation8 + $0x54] ss:$8 sps:$4 sm:$0xff]   ;;  %v1168_v38 = vld [vmem:[#allocation8 + $0x50] ss:$8 sps:$4 sm:$0xff]   ;;  %v1173_v39 = vld [vmem:[#allocation8 + $0x64] ss:$8 sps:$4 sm:$0xff]  }
  0x7a   :  { %v1171_v40 = vld [vmem:[#allocation8 + $0x60] ss:$8 sps:$4 sm:$0xff]   ;;  %v1176_v41 = vld [vmem:[#allocation8 + $0x74] ss:$8 sps:$4 sm:$0xff]   ;;  %v1174_v42 = vld [vmem:[#allocation8 + $0x70] ss:$8 sps:$4 sm:$0xff]  }
  0x7b   :  { %1074 = vmatpush3.bf16.msra.mxu0 %v1124_v6  ;;  %v1179_v43 = vld [vmem:[#allocation8 + $0x84] ss:$8 sps:$4 sm:$0xff]   ;;  %v1177_v44 = vld [vmem:[#allocation8 + $0x80] ss:$8 sps:$4 sm:$0xff]   ;;  %v1182_v45 = vld [vmem:[#allocation8 + $0x94] ss:$8 sps:$4 sm:$0xff]  }
  0x7c   :  { %1075 = vmatprep.subr.bf16.mxu0 %v1399_v0  ;;  %349 = vmatpush1.bf16.msra.mxu1 %v1140_v14  ;;  %v1180_v46 = vld [vmem:[#allocation8 + $0x90] ss:$8 sps:$4 sm:$0xff]   ;;  %v1185_v47 = vld [vmem:[#allocation8 + $0xa4] ss:$8 sps:$4 sm:$0xff]   ;;  %v1183_v48 = vld [vmem:[#allocation8 + $0xa0] ss:$8 sps:$4 sm:$0xff]  }
  0x7d   :  { %350 = vmatprep.subr.bf16.mxu1 %v1141_v15  ;;  %v1188_v49 = vld [vmem:[#allocation8 + $0xb4] ss:$8 sps:$4 sm:$0xff]   ;;  %v1186_v50 = vld [vmem:[#allocation8 + $0xb0] ss:$8 sps:$4 sm:$0xff]   ;;  %v1191_v51 = vld [vmem:[#allocation8 + $0xc4] ss:$8 sps:$4 sm:$0xff]  }
  0x7e   :  { %v1189_v52 = vld [vmem:[#allocation8 + $0xc0] ss:$8 sps:$4 sm:$0xff]   ;;  %v1194_v53 = vld [vmem:[#allocation8 + $0xd4] ss:$8 sps:$4 sm:$0xff]   ;;  %v1192_v54 = vld [vmem:[#allocation8 + $0xd0] ss:$8 sps:$4 sm:$0xff]  }
  0x7f   :  { %1076 = vmatpush3.bf16.msra.mxu0 %v1125_v10  ;;  %v944_v55 = vld [vmem:[%s1599_s2] ss:$0 sm:$0xff]  ;;  %v1197_v63 = vld [vmem:[#allocation8 + $0xe4] ss:$8 sps:$4 sm:$0xff]   ;;  %v1195_v1 = vld [vmem:[#allocation8 + $0xe0] ss:$8 sps:$4 sm:$0xff]  }
  0x80   :  { %1077 = vmatprep.subr.bf16.mxu0 %v1399_v0  ;;  %351 = vmatpush1.bf16.msra.mxu1 %v1143_v17  ;;  %v1200_v2 = vld [vmem:[#allocation8 + $0xf4] ss:$8 sps:$4 sm:$0xff]   ;;  %v1198_v3 = vld [vmem:[#allocation8 + $0xf0] ss:$8 sps:$4 sm:$0xff]   ;;  %v1201_v4 = vld [vmem:[#allocation10 + $0x40] sm:$0xff]  }
  0x81   :  { %352 = vmatprep.subr.bf16.mxu1 %v1144_v18  ;;  %v1202_v5 = vld [vmem:[#allocation10] sm:$0xff]   ;;  %v1203_v6 = vld [vmem:[#allocation10 + $0x48] sm:$0xff]   ;;  %v1205_v8 = vld [vmem:[#allocation10 + $0x50] sm:$0xff]  }
  0x82   :  { %v1204_v7 = vld [vmem:[#allocation10 + $0x8] sm:$0xff]   ;;  %v1206_v9 = vld [vmem:[#allocation10 + $0x10] sm:$0xff]   ;;  %v1207_v10 = vld [vmem:[#allocation10 + $0x58] sm:$0xff]  }
  0x83   :  { %1078 = vmatpush3.bf16.msra.mxu0 %v1126_v12  ;;  %v1208_v11 = vld [vmem:[#allocation10 + $0x18] sm:$0xff]   ;;  %v1209_v12 = vld [vmem:[#allocation10 + $0x60] sm:$0xff]   ;;  %v1211_v14 = vld [vmem:[#allocation10 + $0x68] sm:$0xff]  }
  0x84   :  { %1079 = vmatprep.subr.bf16.mxu0 %v1399_v0  ;;  %353 = vmatpush1.bf16.msra.mxu1 %v1146_v20  ;;  %v1210_v13 = vld [vmem:[#allocation10 + $0x20] sm:$0xff]   ;;  %v1212_v15 = vld [vmem:[#allocation10 + $0x28] sm:$0xff]  }
  0x85   :  { %354 = vmatprep.subr.bf16.mxu1 %v1147_v21 }
  0x87   :  { %1080 = vmatpush3.bf16.msra.mxu0 %v1127_v16  ;;  %v252_v16 = vlaneseq }
  0x88   :  { %1081 = vmatprep.subr.bf16.mxu0 %v1399_v0  ;;  %355 = vmatpush1.bf16.msra.mxu1 %v1149_v23 }
  0x89   :  { %356 = vmatprep.subr.bf16.mxu1 %v1150_v24  ;;  %v253_v17 = vshrl.u32 %v252_v16, 7 }
  0x8b   :  { %1082 = vmatpush3.bf16.msra.mxu0 %v1128_v19  ;;  %v254_v18 = vsub.s32 0, %v253_v17  ;;  %v250_v19 = vld [vmem:[%s1601_s4] sm:$0x3]  ;;  %v258_v20 = vsub.s32 1, %v253_v17 }
  0x8c   :  { %357 = vmatpush1.bf16.msra.mxu1 %v1152_v25  ;;  %591 = vmatprep.subr.bf16.mxu0 %v1155_v28 }
  0x8d   :  { %1036 = vmatprep.subr.bf16.mxu1 %v1201_v4  ;;  %v255_v21 = vrot.slane %v250_v19, %v254_v18  ;;  %v1018_v4 = vld [vmem:[%s1607_s10] ss:$0 sm:$0xff] }
  0x8e   :  { %1084 = vmatmul.mubr.bf16.vlgmr.msra.gmra.mrb[0].mxu0 %v120_v22  ;;  %v259_v22 = vrot.slane %v250_v19, %v258_v20 }
  0x8f   :  { %592 = vmatpush1.bf16.msra.mxu0 %v1153_v27 }
  0x90   :  { %593 = vmatprep.subr.bf16.mxu0 %v1158_v29 }
  0x93   :  { %594 = vmatpush1.bf16.msra.mxu0 %v1156_v30 }
  0x94   :  { %595 = vmatprep.subr.bf16.mxu0 %v1161_v31 }
  0x97   :  { %596 = vmatpush1.bf16.msra.mxu0 %v1159_v32 }
  0x98   :  { %597 = vmatprep.subr.bf16.mxu0 %v1164_v33  ;;  %v1213_v33 = vld [vmem:[#allocation10 + $0x70] sm:$0xff]  }
  0x9b   :  { %598 = vmatpush1.bf16.msra.mxu0 %v1162_v34  ;;  %v1214_v34 = vld [vmem:[#allocation10 + $0x30] sm:$0xff]  }
  0x9c   :  { %599 = vmatprep.subr.bf16.mxu0 %v1167_v35  ;;  %v1215_v35 = vld [vmem:[#allocation10 + $0x78] sm:$0xff]  }
  0x9f   :  { %600 = vmatpush1.bf16.msra.mxu0 %v1165_v36  ;;  %v1216_v36 = vld [vmem:[#allocation10 + $0x38] sm:$0xff]  }
  0xa0   :  { %601 = vmatprep.subr.bf16.mxu0 %v1170_v37  ;;  %v419_v37 = vld [vmem:[%s1603_s6] sm:$0x3] }
  0xa3   :  { %602 = vmatpush1.bf16.msra.mxu0 %v1168_v38  ;;  %v424_v38 = vrot.slane %v419_v37, %v254_v18 }
  0xa4   :  { %603 = vmatprep.subr.bf16.mxu0 %v1173_v39  ;;  %v428_v39 = vrot.slane %v419_v37, %v258_v20 }
  0xa7   :  { %604 = vmatpush1.bf16.msra.mxu0 %v1171_v40 }
  0xa8   :  { %605 = vmatprep.subr.bf16.mxu0 %v1176_v41 }
  0xab   :  { %606 = vmatpush1.bf16.msra.mxu0 %v1174_v42 }
  0xac   :  { %607 = vmatprep.subr.bf16.mxu0 %v1179_v43 }
  0xaf   :  { %608 = vmatpush1.bf16.msra.mxu0 %v1177_v44 }
  0xb0   :  { %609 = vmatprep.subr.bf16.mxu0 %v1182_v45 }
  0xb3   :  { %610 = vmatpush1.bf16.msra.mxu0 %v1180_v46 }
  0xb4   :  { %611 = vmatprep.subr.bf16.mxu0 %v1185_v47 }
  0xb7   :  { %612 = vmatpush1.bf16.msra.mxu0 %v1183_v48 }
  0xb8   :  { %613 = vmatprep.subr.bf16.mxu0 %v1188_v49  ;;  %v1217_v49 = vld [vmem:[#allocation11] sm:$0xff]  }
  0xbb   :  { %614 = vmatpush1.bf16.msra.mxu0 %v1186_v50 }
  0xbc   :  { %615 = vmatprep.subr.bf16.mxu0 %v1191_v51  ;;  %v1218_v51 = vld [vmem:[#allocation11 + $0x8] sm:$0xff]  }
  0xbf   :  { %616 = vmatpush1.bf16.msra.mxu0 %v1189_v52  ;;  %v1219_v52 = vld [vmem:[#allocation11 + $0x10] sm:$0xff]  }
  0xc0   :  { %617 = vmatprep.subr.bf16.mxu0 %v1194_v53  ;;  %v1220_v53 = vld [vmem:[#allocation11 + $0x18] sm:$0xff]  }
  0xc3   :  { %618 = vmatpush1.bf16.msra.mxu0 %v1192_v54  ;;  %v1221_v54 = vld [vmem:[#allocation11 + $0x20] sm:$0xff]  }
  0xc4   :  { %619 = vmatprep.subr.bf16.mxu0 %v1197_v63 }
  0xc7   :  { %620 = vmatpush1.bf16.msra.mxu0 %v1195_v1 }
  0xc8   :  { %621 = vmatprep.subr.bf16.mxu0 %v1200_v2 }
  0xcb   :  { %622 = vmatpush1.bf16.msra.mxu0 %v1198_v3 }
 0x161   :  { %v226_v56 = vpop.f32.mrb[0].mxu0 }
 0x162   :  { %v227_v57 = vadd.f32 %v944_v55, %v226_v56  ;;  %v1085_v58 = vpop.f32.mrb[1].mxu0  ;;  %v1222_v55 = vld [vmem:[#allocation11 + $0x28] sm:$0xff]   ;;  %v1223_v56 = vld [vmem:[#allocation11 + $0x30] sm:$0xff]  }
 0x163   :  { %v229_v59 = vpop.f32.mrb[2].mxu0 }
 0x164   :  { %v232_v60 = vmax.f32 %v227_v57, 0.0  ;;  %v1086_v61 = vpop.f32.mrb[3].mxu0  ;;  %v1224_v57 = vld [vmem:[#allocation11 + $0x38] sm:$0xff]  }
 0x165   :  { %v1001_v59 = vld [vmem:[%s1605_s8] ss:$0 sm:$0xff]  ;;  %s1357_s8 = scalar_lea.vmem %s933_s23, 128 }
 0x166   :  { %v233_v62 = vpack.c.bf16 %v232_v60, %v232_v60  ;;  %p1358_p6 = scmp.ne.s32.totalorder %s933_s23, %s1357_s8  ;;  %p1363_p8 = scmp.lt.s32.totalorder %s1357_s8, %s1357_s8 }
 0x168   :  { %375 = vmatmul.mubr.bf16.vlgmr.msra.gmra.mrb[0].mxu1 %v233_v62  ;;  %p1364_p9 = por %p1363_p8, %p1362_p7 }
 0x169   :  { %1037 = vmatpush3.bf16.msra.mxu1 %v1202_v5 }
 0x16a   :  { %1038 = vmatprep.subr.bf16.mxu1 %v1203_v6  ;;  %p1365_p10 = pnand %p1364_p9, %p1358_p6 }
 0x16d   :  { %1039 = vmatpush3.bf16.msra.mxu1 %v1204_v7 }
 0x16e   :  { %1040 = vmatprep.subr.bf16.mxu1 %v1205_v8 }
 0x171   :  { %1041 = vmatpush3.bf16.msra.mxu1 %v1206_v9 }
 0x172   :  { %1042 = vmatprep.subr.bf16.mxu1 %v1207_v10 }
 0x175   :  { %1043 = vmatpush3.bf16.msra.mxu1 %v1208_v11 }
 0x176   :  { %1044 = vmatprep.subr.bf16.mxu1 %v1209_v12 }
 0x179   :  { %1045 = vmatpush3.bf16.msra.mxu1 %v1210_v13 }
 0x17a   :  { %1046 = vmatprep.subr.bf16.mxu1 %v1211_v14 }
 0x17d   :  { %1047 = vmatpush3.bf16.msra.mxu1 %v1212_v15 }
 0x17e   :  { %1048 = vmatprep.subr.bf16.mxu1 %v1213_v33 }
 0x181   :  { %1049 = vmatpush3.bf16.msra.mxu1 %v1214_v34 }
 0x182   :  { %1050 = vmatprep.subr.bf16.mxu1 %v1215_v35 }
 0x185   :  { %1051 = vmatpush3.bf16.msra.mxu1 %v1216_v36 }
 0x186   :  { %1087 = vmatprep.subr.bf16.mxu1 %v1399_v0 }
 0x23b   :  { %v376_v23 = vpop.f32.mrb[0].mxu1 }
 0x23c   :  { %v377_v24 = vadd.f32 %v376_v23, %v255_v21  ;;  %v378_v25 = vpop.f32.mrb[1].mxu1 }
 0x23d   :  { %v379_v26 = vadd.f32 %v378_v25, %v259_v22  ;;  %v380_v27 = vpop.f32.mrb[2].mxu1 }
 0x23e   :  { %v383_v28 = vmax.f32 %v377_v24, 0.0  ;;  %v381_v29 = vpop.f32.mrb[3].mxu1 }
 0x23f   :  { %v384_v30 = vmax.f32 %v379_v26, 0.0 }
 0x240   :  { %v385_v32 = vpack.c.bf16 %v383_v28, %v383_v28 }
 0x241   :  { %v386_v31 = vpack.c.bf16 %v384_v30, %v384_v30 }
 0x243   :  { %623 = vmatprep.mubr.bf16.mxu0 %v386_v31 }
 0x244   :  { %624 = vmatmul.mubr.bf16.vlgmr.msra.gmra.mrb[4].mxu0 %v385_v32 }
 0x317   :  { %v625_v40 = vpop.f32.mrb[4].mxu0 }
 0x318   :  { %v626_v41 = vadd.f32 %v625_v40, %v424_v38  ;;  %v627_v42 = vpop.f32.mrb[5].mxu0 }
 0x319   :  { %v628_v43 = vadd.f32 %v627_v42, %v428_v39  ;;  %v629_v44 = vpop.f32.mrb[6].mxu0 }
 0x31a   :  { %v632_v45 = vmax.f32 %v626_v41, 0.0  ;;  %v630_v46 = vpop.f32.mrb[7].mxu0 }
 0x31b   :  { %v633_v47 = vmax.f32 %v628_v43, 0.0 }
 0x31c   :  { %v634_v50 = vpack.c.bf16 %v632_v45, %v632_v45 }
 0x31d   :  { %v635_v48 = vpack.c.bf16 %v633_v47, %v633_v47 }
 0x31f   :  { %803 = vmatprep.mubr.bf16.mxu1 %v635_v48 }
 0x320   :  { %804 = vmatmul.mubr.bf16.vlgmr.msra.gmra.mrb[4].mxu1 %v634_v50 }
 0x321   :  { %1088 = vmatpush3.bf16.msra.mxu1 %v1217_v49  ;;  %1103 = vmatprep.mubr.msk.bf16.mxu1 %vm1400_vm0, %v1399_v0 }
 0x322   :  { %1089 = vmatprep.subr.bf16.mxu1 %v1399_v0 }
 0x325   :  { %1090 = vmatpush3.bf16.msra.mxu1 %v1218_v51 }
 0x326   :  { %1091 = vmatprep.subr.bf16.mxu1 %v1399_v0 }
 0x329   :  { %1092 = vmatpush3.bf16.msra.mxu1 %v1219_v52 }
 0x32a   :  { %1093 = vmatprep.subr.bf16.mxu1 %v1399_v0 }
 0x32d   :  { %1094 = vmatpush3.bf16.msra.mxu1 %v1220_v53 }
 0x32e   :  { %1095 = vmatprep.subr.bf16.mxu1 %v1399_v0 }
 0x331   :  { %1096 = vmatpush3.bf16.msra.mxu1 %v1221_v54 }
 0x332   :  { %1097 = vmatprep.subr.bf16.mxu1 %v1399_v0 }
 0x335   :  { %1098 = vmatpush3.bf16.msra.mxu1 %v1222_v55 }
 0x336   :  { %1099 = vmatprep.subr.bf16.mxu1 %v1399_v0 }
 0x339   :  { %1100 = vmatpush3.bf16.msra.mxu1 %v1223_v56 }
 0x33a   :  { %1101 = vmatprep.subr.bf16.mxu1 %v1399_v0 }
 0x33d   :  { %1102 = vmatpush3.bf16.msra.mxu1 %v1224_v57 }
 0x3f3   :  { %v1052_v58 = vpop.f32.mrb[4].mxu1 }
 0x3f4   :  { %v1053_v60 = vpop.f32.mrb[5].mxu1 }
 0x3f5   :  { %v1054_v61 = vadd.f32 %v1053_v60, %v1052_v58  ;;  %v1055_v62 = vpop.f32.mrb[6].mxu1 }
 0x3f6   :  { %v1056_v63 = vpop.f32.mrb[7].mxu1 }
 0x3f7   :  { %v806_v1 = vadd.f32 %v1054_v61, %v1001_v59 }
 0x3f9   :  { %v811_v2 = vmax.f32 %v806_v1, 0.0 }
 0x3fb   :  { %v812_v3 = vpack.c.bf16 %v811_v2, %v811_v2 }
 0x3fd   :  { %1104 = vmatmul.mubr.bf16.vlgmr.msra.gmra.mrb[8].mxu1 %v812_v3 }
 0x4d0   :  { %v918_v0 = vpop.f32.mrb[8].mxu1 }
 0x4d1   :  { %v919_v5 = vadd.f32 %v1018_v4, %v918_v0  ;;  %v1105_v6 = vpop.f32.mrb[9].mxu1 }
 0x4d2   :  { %v921_v7 = vpop.f32.mrb[10].mxu1 }
 0x4d3   :  { %v924_v8 = vmax.f32 %v919_v5, 0.0  ;;  %v1106_v9 = vpop.f32.mrb[11].mxu1 }
 0x4d5   :  { %925 = vst [vmem:[#allocation13] sm:$0xff] %v924_v8 }
 0x4d6   :  { %1368 = shalt.err (!%p1365_p10)
}
 0x4d7   :  { %s1369_s10 = scalar_lea.hbm %s1608_s11, 128 }
 0x4d8   :  { %p1370_p11 = scmp.ne.s32.totalorder %s1608_s11, %s1369_s10  ;;  %p1373_p12 = scmp.lt.u32.totalorder %s1369_s10, %s1608_s11 }
 0x4da   :  { %p1375_p13 = pnand %p1373_p12, %p1370_p11 }
 0x4dc   :  { %1378 = shalt.err (!%p1375_p13)
}
 0x4dd   :  { %935 = dma.vmem_to_hbm [thread:$0]  %s933_s23, 128, %s1608_s11, [#allocation4]  }
 0x4de   :  { %1387 = dma.done.wait [#allocation4], 128  }
 0x4df   :  { %1388 = vsyncadd [#allocation4], 4294967168 }
 0x4e0   :  { %939 = vsyncpa [#allocation3], 1 }
 0x4e1   :  { %940 = vsyncpa [#allocation6], 1 }
 0x4e2   :  { %941 = vsyncpa [#allocation9], 1 }
 0x4e3   :  { %942 = vsyncpa [#allocation12], 1 }
 0x4e4   :  { %943 = vsyncpa [#allocation4], 1 }

</bundles_post_ra>
